<compile_context>
chip_gen: v7x
topology: tpu7x:2x2x1
jax: 0.10.0
libtpu: 0.0.40
codegen_flags: <defaults>
</compile_context>

<pallas_src>
import jax
import jax.numpy as jnp
from jax.experimental import pallas as pl
from jax.experimental.pallas import tpu as pltpu

# ----- module hyper-params (consistent with the forward) -----
Z_DIM = 8         # latent dim fed to the generator
IN_DIM = 32       # `in_dim` arg of Generator
OUT_DIM = 2       # `out_dim` arg (spiral points are 2-D)
H1, H2 = 128, 32  # fixed hidden widths from the module
NEG_SLOPE = 0.3


def _leaky_relu(x, slope):
    return jnp.where(x > 0, x, slope * x)


def _round_up(n, m):
    return (n + m - 1) // m * m


def generator_kernel(x_ref,
                     w12_ref, b12_ref,
                     w3_ref, b3_ref,
                     w4_ref, b4_ref,
                     o_ref):
    """One batch tile of the fused MLP (3 matmuls), entirely in VMEM.

    Matmul LHS is cast to the weight dtype so the same kernel serves f32 or
    bf16 weights (MXU accumulates in f32 either way); bias add and LeakyReLU
    stay in f32 on the VPU.
    """
    wdt = w12_ref.dtype
    h = jnp.dot(x_ref[...].astype(wdt), w12_ref[...],
                preferred_element_type=jnp.float32) + b12_ref[...]
    h = _leaky_relu(h, NEG_SLOPE)
    h = jnp.dot(h.astype(w3_ref.dtype), w3_ref[...],
                preferred_element_type=jnp.float32) + b3_ref[...]
    h = _leaky_relu(h, NEG_SLOPE)
    h = jnp.dot(h.astype(w4_ref.dtype), w4_ref[...],
                preferred_element_type=jnp.float32) + b4_ref[...]
    o_ref[...] = h.astype(o_ref.dtype)


def fuse_params(params, *, matmul_dtype=jnp.float32):
    """Precompute the fused / kernel-layout parameters ONCE (not per call).

    Layers 1 and 2 have no activation between them, so they fold into a single
    (Z_DIM, 128) matmul: W12 = w1 @ w2, B12 = b1 @ w2 + b2.  Biases stay f32;
    weights are stored in `matmul_dtype` (bf16 recommended on v6e/v7x).
    """
    w12 = (params["w1"] @ params["w2"]).astype(matmul_dtype)
    b12 = (params["b1"] @ params["w2"] + params["b2"]).astype(jnp.float32)
    return {
        "w12": w12,
        "b12": b12,
        "w3": params["w3"].astype(matmul_dtype),
        "b3": params["b3"].astype(jnp.float32),
        "w4": params["w4"].astype(matmul_dtype),
        "b4": params["b4"].astype(jnp.float32),
    }


def generator_forward(x, fused, *, tile_b=2048):
    """x: (B, Z_DIM) f32.  fused: output of fuse_params.  Returns (B, OUT_DIM) f32."""
    B = x.shape[0]

    # Tile: big enough to amortize the ~0.35 us/step grid overhead, capped at
    # ceil(B/2) (rounded to 8) so >= 2 grid steps exist for v7x's two TCs.
    tile = min(tile_b, _round_up(pl.cdiv(B, 2), 8))
    tile = max(tile, 8)
    grid = (pl.cdiv(B, tile),)   # ragged last block handled (masked) by Pallas

    def full_spec(arr):
        # whole-array block, constant index -> stays resident in VMEM
        return pl.BlockSpec(arr.shape, lambda i: (0, 0))

    w12, b12 = fused["w12"], fused["b12"]
    w3, b3 = fused["w3"], fused["b3"]
    w4, b4 = fused["w4"], fused["b4"]

    return pl.pallas_call(
        generator_kernel,
        out_shape=jax.ShapeDtypeStruct((B, OUT_DIM), jnp.float32),
        grid_spec=pltpu.PrefetchScalarGridSpec(
            num_scalar_prefetch=0,
            grid=grid,
            in_specs=[
                pl.BlockSpec((tile, Z_DIM), lambda i: (i, 0)),   # x batch tile
                full_spec(w12), full_spec(b12),
                full_spec(w3), full_spec(b3),
                full_spec(w4), full_spec(b4),
            ],
            # Narrow output block: last dim == full array dim satisfies the
            # (8,128) rule; no lane padding, no wrapper slice pass.
            out_specs=pl.BlockSpec((tile, OUT_DIM), lambda i: (i, 0)),
        ),
        compiler_params=pltpu.CompilerParams(
            dimension_semantics=("parallel",)),   # shards tiles across v7x TCs
    )(x, w12, b12, w3, b3, w4, b4)


def init_params(key):
    """Deterministic PyTorch-style init: U(-1/sqrt(fan_in), 1/sqrt(fan_in)).
    Weights are stored as (in_features, out_features)."""
    dims = [(Z_DIM, IN_DIM), (IN_DIM, H1), (H1, H2), (H2, OUT_DIM)]
    params = {}
    for idx, (fan_in, fan_out) in enumerate(dims, start=1):
        key, kw, kb = jax.random.split(key, 3)
        bound = 1.0 / jnp.sqrt(float(fan_in))
        params[f"w{idx}"] = jax.random.uniform(
            kw, (fan_in, fan_out), jnp.float32, -bound, bound)
        params[f"b{idx}"] = jax.random.uniform(
            kb, (1, fan_out), jnp.float32, -bound, bound)
    return params


def reference_forward(x, params):
    """Unfused pure-JAX reference matching the PyTorch module."""
    h = x @ params["w1"] + params["b1"]
    h = h @ params["w2"] + params["b2"]
    h = _leaky_relu(h, NEG_SLOPE)
    h = h @ params["w3"] + params["b3"]
    h = _leaky_relu(h, NEG_SLOPE)
    h = h @ params["w4"] + params["b4"]
    return h


if __name__ == "__main__":
    key = jax.random.PRNGKey(0)
    key, kx = jax.random.split(key)

    # B=20 is not a tile multiple -> exercises the masked ragged boundary
    # block and (with the default tile cap) a 2-step parallel grid.
    B = 20
    x = jax.random.normal(kx, (B, Z_DIM), jnp.float32)
    params = init_params(key)
    ref = reference_forward(x, params)

    # f32 path, default tile (tile=16 -> 2 grid steps, last one ragged).
    fused_f32 = fuse_params(params)
    out = jax.block_until_ready(generator_forward(x, fused_f32))
    assert out.shape == (B, OUT_DIM)
    assert jnp.allclose(out, ref, atol=1e-5, rtol=1e-5), \
        "mismatch vs pure-JAX reference (f32, default tile)"

    # f32 path, small tile (tile=8 -> 3 grid steps).
    out_small = jax.block_until_ready(generator_forward(x, fused_f32, tile_b=8))
    assert jnp.allclose(out_small, ref, atol=1e-5, rtol=1e-5), \
        "mismatch vs pure-JAX reference (f32, small tile)"

    # bf16 matmul-operand path (v6e/v7x MXU-friendly); looser tolerance since
    # operands are rounded to bf16 while accumulation stays f32.
    fused_bf16 = fuse_params(params, matmul_dtype=jnp.bfloat16)
    out_bf16 = jax.block_until_ready(generator_forward(x, fused_bf16))
    assert jnp.allclose(out_bf16, ref, atol=5e-2, rtol=5e-2), \
        "mismatch vs pure-JAX reference (bf16 operands)"

    print("KERNEL_OK")
</pallas_src>

<mosaic_0001>
module attributes {stable_mosaic.version = 11 : i64} {
  func.func @generator_kernel(%arg0: i32, %arg1: memref<16x8xf32, #tpu.memory_space<vmem>>, %arg2: memref<8x128xf32, #tpu.memory_space<vmem>>, %arg3: memref<1x128xf32, #tpu.memory_space<vmem>>, %arg4: memref<128x32xf32, #tpu.memory_space<vmem>>, %arg5: memref<1x32xf32, #tpu.memory_space<vmem>>, %arg6: memref<32x2xf32, #tpu.memory_space<vmem>>, %arg7: memref<1x2xf32, #tpu.memory_space<vmem>>, %arg8: memref<16x2xf32, #tpu.memory_space<vmem>>) attributes {dimension_semantics = [#tpu.dimension_semantics<parallel>], iteration_bounds = array<i64: 2>, scalar_prefetch = 0 : i64, scratch_operands = 0 : i64, tpu.core_type = #tpu.core_type<tc>, window_params = [{transform_indices = @transform_0, window_bounds = array<i64: 16, 8>}, {pipeline_mode = #tpu.pipeline_mode<synchronous>, transform_indices = @transform_1, window_bounds = array<i64: 8, 128>}, {pipeline_mode = #tpu.pipeline_mode<synchronous>, transform_indices = @transform_2, window_bounds = array<i64: 1, 128>}, {pipeline_mode = #tpu.pipeline_mode<synchronous>, transform_indices = @transform_3, window_bounds = array<i64: 128, 32>}, {pipeline_mode = #tpu.pipeline_mode<synchronous>, transform_indices = @transform_4, window_bounds = array<i64: 1, 32>}, {pipeline_mode = #tpu.pipeline_mode<synchronous>, transform_indices = @transform_5, window_bounds = array<i64: 32, 2>}, {pipeline_mode = #tpu.pipeline_mode<synchronous>, transform_indices = @transform_6, window_bounds = array<i64: 1, 2>}, {transform_indices = @transform_7, window_bounds = array<i64: 16, 2>}]} {
    %c0 = arith.constant 0 : index
    %c0_0 = arith.constant 0 : index
    %0 = vector.load %arg1[%c0, %c0_0] : memref<16x8xf32, #tpu.memory_space<vmem>>, vector<16x8xf32>
    %c0_1 = arith.constant 0 : index
    %c0_2 = arith.constant 0 : index
    %1 = vector.load %arg2[%c0_1, %c0_2] : memref<8x128xf32, #tpu.memory_space<vmem>>, vector<8x128xf32>
    %cst = arith.constant dense<0.000000e+00> : vector<16x128xf32>
    %2 = tpu.matmul %0, %1, %cst {dimension_numbers = #tpu.dot_dimension_numbers<[1], [0], [0], [1], [0, 0, 1, 1], [], []>} : vector<16x8xf32>, vector<8x128xf32>, vector<16x128xf32> -> vector<16x128xf32>
    %c0_3 = arith.constant 0 : index
    %c0_4 = arith.constant 0 : index
    %3 = vector.load %arg3[%c0_3, %c0_4] : memref<1x128xf32, #tpu.memory_space<vmem>>, vector<1x128xf32>
    %4 = vector.broadcast %3 : vector<1x128xf32> to vector<16x128xf32>
    %5 = arith.addf %2, %4 : vector<16x128xf32>
    %cst_5 = arith.constant 0.000000e+00 : f32
    %6 = vector.broadcast %cst_5 : f32 to vector<16x128xf32>
    %7 = arith.cmpf ogt, %5, %6 : vector<16x128xf32>
    %cst_6 = arith.constant 3.000000e-01 : f32
    %8 = vector.broadcast %cst_6 : f32 to vector<16x128xf32>
    %9 = arith.mulf %8, %5 : vector<16x128xf32>
    %10 = arith.select %7, %5, %9 : vector<16x128xi1>, vector<16x128xf32>
    %c0_7 = arith.constant 0 : index
    %c0_8 = arith.constant 0 : index
    %11 = vector.load %arg4[%c0_7, %c0_8] : memref<128x32xf32, #tpu.memory_space<vmem>>, vector<128x32xf32>
    %cst_9 = arith.constant dense<0.000000e+00> : vector<16x32xf32>
    %12 = tpu.matmul %10, %11, %cst_9 {dimension_numbers = #tpu.dot_dimension_numbers<[1], [0], [0], [1], [0, 0, 1, 1], [], []>} : vector<16x128xf32>, vector<128x32xf32>, vector<16x32xf32> -> vector<16x32xf32>
    %c0_10 = arith.constant 0 : index
    %c0_11 = arith.constant 0 : index
    %13 = vector.load %arg5[%c0_10, %c0_11] : memref<1x32xf32, #tpu.memory_space<vmem>>, vector<1x32xf32>
    %14 = vector.broadcast %13 : vector<1x32xf32> to vector<16x32xf32>
    %15 = arith.addf %12, %14 : vector<16x32xf32>
    %cst_12 = arith.constant 0.000000e+00 : f32
    %16 = vector.broadcast %cst_12 : f32 to vector<16x32xf32>
    %17 = arith.cmpf ogt, %15, %16 : vector<16x32xf32>
    %cst_13 = arith.constant 3.000000e-01 : f32
    %18 = vector.broadcast %cst_13 : f32 to vector<16x32xf32>
    %19 = arith.mulf %18, %15 : vector<16x32xf32>
    %20 = arith.select %17, %15, %19 : vector<16x32xi1>, vector<16x32xf32>
    %c0_14 = arith.constant 0 : index
    %c0_15 = arith.constant 0 : index
    %21 = vector.load %arg6[%c0_14, %c0_15] : memref<32x2xf32, #tpu.memory_space<vmem>>, vector<32x2xf32>
    %cst_16 = arith.constant dense<0.000000e+00> : vector<16x2xf32>
    %22 = tpu.matmul %20, %21, %cst_16 {dimension_numbers = #tpu.dot_dimension_numbers<[1], [0], [0], [1], [0, 0, 1, 1], [], []>} : vector<16x32xf32>, vector<32x2xf32>, vector<16x2xf32> -> vector<16x2xf32>
    %c0_17 = arith.constant 0 : index
    %c0_18 = arith.constant 0 : index
    %23 = vector.load %arg7[%c0_17, %c0_18] : memref<1x2xf32, #tpu.memory_space<vmem>>, vector<1x2xf32>
    %24 = vector.broadcast %23 : vector<1x2xf32> to vector<16x2xf32>
    %25 = arith.addf %22, %24 : vector<16x2xf32>
    %c0_19 = arith.constant 0 : index
    %c0_20 = arith.constant 0 : index
    %26 = vector.load %arg8[%c0_19, %c0_20] : memref<16x2xf32, #tpu.memory_space<vmem>>, vector<16x2xf32>
    tpu.vector_store %arg8[%c0_19, %c0_20], %25 {strides = array<i32>} : memref<16x2xf32, #tpu.memory_space<vmem>>, vector<16x2xf32>,
    return
  }
  func.func @transform_0(%arg0: i32) -> (i32, i32) {
    %c0_i32 = arith.constant 0 : i32
    %c0_i32_0 = arith.constant 0 : i32
    return %arg0, %c0_i32 : i32, i32
  }
  func.func @transform_1(%arg0: i32) -> (i32, i32) {
    %c0_i32 = arith.constant 0 : i32
    %c0_i32_0 = arith.constant 0 : i32
    %c0_i32_1 = arith.constant 0 : i32
    return %c0_i32, %c0_i32_0 : i32, i32
  }
  func.func @transform_2(%arg0: i32) -> (i32, i32) {
    %c0_i32 = arith.constant 0 : i32
    %c0_i32_0 = arith.constant 0 : i32
    %c0_i32_1 = arith.constant 0 : i32
    return %c0_i32, %c0_i32_0 : i32, i32
  }
  func.func @transform_3(%arg0: i32) -> (i32, i32) {
    %c0_i32 = arith.constant 0 : i32
    %c0_i32_0 = arith.constant 0 : i32
    %c0_i32_1 = arith.constant 0 : i32
    return %c0_i32, %c0_i32_0 : i32, i32
  }
  func.func @transform_4(%arg0: i32) -> (i32, i32) {
    %c0_i32 = arith.constant 0 : i32
    %c0_i32_0 = arith.constant 0 : i32
    %c0_i32_1 = arith.constant 0 : i32
    return %c0_i32, %c0_i32_0 : i32, i32
  }
  func.func @transform_5(%arg0: i32) -> (i32, i32) {
    %c0_i32 = arith.constant 0 : i32
    %c0_i32_0 = arith.constant 0 : i32
    %c0_i32_1 = arith.constant 0 : i32
    return %c0_i32, %c0_i32_0 : i32, i32
  }
  func.func @transform_6(%arg0: i32) -> (i32, i32) {
    %c0_i32 = arith.constant 0 : i32
    %c0_i32_0 = arith.constant 0 : i32
    %c0_i32_1 = arith.constant 0 : i32
    return %c0_i32, %c0_i32_0 : i32, i32
  }
  func.func @transform_7(%arg0: i32) -> (i32, i32) {
    %c0_i32 = arith.constant 0 : i32
    %c0_i32_0 = arith.constant 0 : i32
    return %arg0, %c0_i32 : i32, i32
  }
}

</mosaic_0001>

<bundles_post_ra>
// kernel: tpu_custom_call.1
= control target key start
LH: loop header
LB: loop body
LE: loop exit
PB: predicated region body
PF: predicated region fallthrough
CT: control target
= control target key end

     0   :  { %s1185_s24 = smov 0   ;;  %s1187_s25 = smov 0   ;;  %s1340_s0 = inlined_call_operand.vmem [shape: f32[20,8], index: 0, kind: input, shape index: {}]   ;;  %s1341_s1 = inlined_call_operand.vmem [shape: f32[8,128], index: 1, kind: input, shape index: {}]   ;;  %s1342_s2 = inlined_call_operand.vmem [shape: f32[1,128], index: 2, kind: input, shape index: {}]   ;;  %s1343_s3 = inlined_call_operand.vmem [shape: f32[128,32], index: 3, kind: input, shape index: {}]   ;;  %s1344_s4 = inlined_call_operand.vmem [shape: f32[1,32], index: 4, kind: input, shape index: {}]   ;;  %s1345_s5 = inlined_call_operand.vmem [shape: f32[32,2], index: 5, kind: input, shape index: {}]   ;;  %s1346_s6 = inlined_call_operand.vmem [shape: f32[1,2], index: 6, kind: input, shape index: {}]   ;;  %s1347_s7 = inlined_call_operand.vmem [shape: f32[20,2], index: 7, kind: output, shape index: {}]  }
   0x1   :  { %s1189_s26 = smov 0  }
   0x2 LB: > { %s1198_s27 = sadd.s32 4294967295, %s1111_s26   ;;  %s1200_s28 = sadd.s32 1, %s1111_s26   ;;  %s1111_s26 = sphi %s1189_s26, %s1351_s26   ;;  %s1107_s25 = sphi %s1187_s25, %s1350_s25   ;;  %s1103_s24 = sphi %s1185_s24, %s1349_s24  }
   0x3   : > { %s173_s29 = ssub.s32 %s1111_s26, %s1200_s28  ;;  %s176_s30 = sadd.s32 1, %s1107_s25 }
   0x4   : > { %p174_p0 = scmp.eq.s32.totalorder %s173_s29, 0  ;;  %p186_p1 = scmp.ne.s32.totalorder %s1107_s25, %s1103_s24 }
   0x5   : > { %p187_p2 = scmp.eq.s32.totalorder %s1198_s27, 1  ;;  %p820_p3 = scmp.ge.s32.totalorder %s1111_s26, 1 }
   0x6   : > { %s1208_s8 = scalar_select %p174_p0, %s1107_s25, %s176_s30  }
   0x7   : > { %p1210_p4 = por %p187_p2, %p186_p1  ;;  %p246_p5 = scmp.lt.s32.totalorder %s1111_s26, 3 }
   0x9   : > { %p247_p6 = pnand %p820_p3, %p246_p5 }
   0xa   : > { %v302_v0 = vld [vmem:[%s1341_s1] sm:$0xff] (!%p247_p6)  ;;  %s1218_s12 = sshll.u32 (!%p247_p6), %s1198_s27, 1  ;;  %v399_v2 = vld [vmem:[%s1343_s3 + $0x8] sm:$0xff] (!%p247_p6)  ;;  %v400_v4 = vld [vmem:[%s1343_s3 + $0x10] sm:$0xff] (!%p247_p6)  ;;  %vm310_vm0 = vcmask (!%p247_p6), 64512   ;;  %vm513_vm5 = vcmask (!%p247_p6), 261120  }
   0xb   : > { %250 = sbr.rel (%p247_p6) target bundleno = 727 (0x2d7), region = 48  ;;  %v398_v1 = vld [vmem:[%s1343_s3] sm:$0xff] (!%p247_p6)  ;;  %878 = vmatprep.subr.mxu0 (!%p247_p6), %v302_v0  ;;  %p286_p7 = scmp.lt.s32.totalorder (!%p247_p6), %s1218_s12, 2  ;;  %v401_v5 = vld [vmem:[%s1343_s3 + $0x18] sm:$0xff] (!%p247_p6)  ;;  %v403_v8 = vld [vmem:[%s1343_s3 + $0x28] sm:$0xff] (!%p247_p6)  ;;  %vm595_vm6 = vcmask (!%p247_p6), 15360  }
   0xc   : > { %v929_v3 = vpack.c.bf16 (!%p247_p6), %v399_v2, %v398_v1  ;;  %879 = vmatpush3.msra.mxu0 (!%p247_p6), %v302_v0  ;;  %v933_v6 = vpack.c.bf16 (!%p247_p6), %v401_v5, %v400_v4  ;;  %v402_v7 = vld [vmem:[%s1343_s3 + $0x20] sm:$0xff] (!%p247_p6)  ;;  %v404_v10 = vld [vmem:[%s1343_s3 + $0x30] sm:$0xff] (!%p247_p6)  ;;  %v405_v11 = vld [vmem:[%s1343_s3 + $0x38] sm:$0xff] (!%p247_p6)  ;;  %s278_s14 = sand.u32 (!%p247_p6), 1, %s1103_s24  }
   0xd   : > { %v937_v9 = vpack.c.bf16 (!%p247_p6), %v403_v8, %v402_v7  ;;  %v941_v14 = vpack.c.bf16 (!%p247_p6), %v405_v11, %v404_v10  ;;  %v406_v15 = vld [vmem:[%s1343_s3 + $0x40] sm:$0xff] (!%p247_p6)  ;;  %v407_v16 = vld [vmem:[%s1343_s3 + $0x48] sm:$0xff] (!%p247_p6)  ;;  %v408_v18 = vld [vmem:[%s1343_s3 + $0x50] sm:$0xff] (!%p247_p6)  ;;  %s821_s15 = sshll.u32 (!%p247_p6), %s278_s14, 4 }
   0xe   : > { %930 = vmatprep.subr.bf16.mxu1 (!%p247_p6), %v929_v3  ;;  %v945_v17 = vpack.c.bf16 (!%p247_p6), %v407_v16, %v406_v15  ;;  %v409_v19 = vld [vmem:[%s1343_s3 + $0x58] sm:$0xff] (!%p247_p6)  ;;  %v410_v21 = vld [vmem:[%s1343_s3 + $0x60] sm:$0xff] (!%p247_p6)  ;;  %v411_v22 = vld [vmem:[%s1343_s3 + $0x68] sm:$0xff] (!%p247_p6)  ;;  %s1295_s18 = scalar_lea.vmem (!%p247_p6), [#allocation2], %s821_s15  }
   0xf   : > { %932 = vmatpush3.bf16.msra.mxu1 (!%p247_p6), %v929_v3  ;;  %v949_v20 = vpack.c.bf16 (!%p247_p6), %v409_v19, %v408_v18  ;;  %v953_v23 = vpack.c.bf16 (!%p247_p6), %v411_v22, %v410_v21  ;;  %v412_v24 = vld [vmem:[%s1343_s3 + $0x70] sm:$0xff] (!%p247_p6)  ;;  %v413_v25 = vld [vmem:[%s1343_s3 + $0x78] sm:$0xff] (!%p247_p6)  ;;  %v824_v27 = vld [vmem:[%s1342_s2] ss:$0 sm:$0xff] (!%p247_p6) }
  0x10   : > { %934 = vmatprep.subr.bf16.mxu1 (!%p247_p6), %v933_v6  ;;  %v957_v26 = vpack.c.bf16 (!%p247_p6), %v413_v25, %v412_v24  ;;  %v502_v36 = vld [vmem:[%s1345_s5] sm:$0xff] (!%p247_p6)  ;;  %v503_v37 = vld [vmem:[%s1345_s5 + $0x8] sm:$0xff] (!%p247_p6)  ;;  %v504_v39 = vld [vmem:[%s1345_s5 + $0x10] sm:$0xff] (!%p247_p6) }
  0x11   : > { %v961_v38 = vpack.c.bf16 (!%p247_p6), %v503_v37, %v502_v36  ;;  %v505_v40 = vld [vmem:[%s1345_s5 + $0x18] sm:$0xff] (!%p247_p6)  ;;  %v827_v42 = vld [vmem:[%s1344_s4] ss:$0 sm:$0xff] (!%p247_p6) }
  0x12   : > { %s287_s29 = scalar_select %p286_p7, %s1218_s12, 2  ;;  %v965_v41 = vpack.c.bf16 %v505_v40, %v504_v39  ;;  %v828_v51 = vld [vmem:[%s1346_s6] ss:$0 sm:$0xff] }
  0x13   : > { %936 = vmatpush3.bf16.msra.mxu1 %v933_v6  ;;  %962 = vmatprep.subr.bf16.mxu0 %v961_v38  ;;  %s606_s24 = ssub.s32 (%p1210_p4), 3, %s1218_s12  ;;  %s848_s19 = sshll.u32 (%p1210_p4), %s1198_s27, 4 }
  0x14   : > { %s823_s30 = sshll.u32 %s287_s29, 3  ;;  %938 = vmatprep.subr.bf16.mxu1 %v937_v9  ;;  %p607_p8 = scmp.lt.s32.totalorder (%p1210_p4), %s606_s24, 2 }
  0x15   : > { %s289_s13 = scalar_lea.vmem %s1340_s0, %s823_s30  ;;  %s1306_s22 = scalar_lea.vmem (%p1210_p4), %s1347_s7, %s848_s19  }
  0x16   : > { %v300_v12 = vld [vmem:[%s289_s13] sm:$0xff]  ;;  %v301_v13 = vld [vmem:[%s289_s13 + $0x8] sm:$0xff] }
  0x17   : > { %880 = vmatprep.mubr.msk.f32.mxu0 %vm310_vm0, %v300_v12  ;;  %940 = vmatpush3.bf16.msra.mxu1 %v937_v9 }
  0x18   : > { %881 = vmatmul.mubr.msk.f32.vlgmr.msra.gmra.mrb[0].mxu0 %vm310_vm0, %v301_v13  ;;  %942 = vmatprep.subr.bf16.mxu1 %v941_v14 }
  0x19   : > { %964 = vmatpush3.bf16.msra.mxu0 %v961_v38 }
  0x1a   : > { %966 = vmatprep.subr.bf16.mxu0 %v965_v41 }
  0x1b   : > { %944 = vmatpush3.bf16.msra.mxu1 %v941_v14 }
  0x1c   : > { %946 = vmatprep.subr.bf16.mxu1 %v945_v17 }
  0x1d   : > { %968 = vmatpush3.bf16.msra.mxu0 %v965_v41 }
  0x1f   : > { %948 = vmatpush3.bf16.msra.mxu1 %v945_v17 }
  0x20   : > { %950 = vmatprep.subr.bf16.mxu1 %v949_v20 }
  0x23   : > { %952 = vmatpush3.bf16.msra.mxu1 %v949_v20 }
  0x24   : > { %954 = vmatprep.subr.bf16.mxu1 %v953_v23 }
  0x27   : > { %956 = vmatpush3.bf16.msra.mxu1 %v953_v23 }
  0x28   : > { %958 = vmatprep.subr.bf16.mxu1 %v957_v26 }
  0x2b   : > { %960 = vmatpush3.bf16.msra.mxu1 %v957_v26 }
  0xeb   : > { %v882_v28 = vpop.f32.mrb[0].mxu0 }
  0xec   : > { %v389_v29 = vadd.f32 %v882_v28, %v824_v27  ;;  %v383_v30 = vpop.f32.mrb[1].mxu0 }
  0xed   : > { %v384_v31 = vadd.f32 %v824_v27, %v383_v30 }
  0xee   : > { %v395_v32 = vmul.f32 0.3, %v389_v29  ;;  %vm393_vm2 = vcmp.gt.f32.partialorder %v389_v29, 0.0 }
  0xef   : > { %vm392_vm1 = vcmp.gt.f32.partialorder %v384_v31, 0.0  ;;  %v394_v33 = vmul.f32 0.3, %v384_v31 }
  0xf0   : > { %v397_v35 = vsel %vm393_vm2, %v389_v29, %v395_v32 }
  0xf1   : > { %v396_v34 = vsel %vm392_vm1, %v384_v31, %v394_v33 }
  0xf2   : > { %915 = vmatprep.mubr.f32.mxu1 %v396_v34 }
  0xf3   : > { %916 = vmatmul.mubr.f32.vlgmr.msra.gmra.mrb[0].mxu1 %v397_v35 }
 0x1c6   : > { %v917_v43 = vpop.f32.mrb[0].mxu1 }
 0x1c7   : > { %v493_v44 = vadd.f32 %v917_v43, %v827_v42  ;;  %v487_v45 = vpop.f32.mrb[1].mxu1 }
 0x1c8   : > { %v488_v46 = vadd.f32 %v827_v42, %v487_v45 }
 0x1c9   : > { %v499_v47 = vmul.f32 0.3, %v493_v44  ;;  %vm497_vm3 = vcmp.gt.f32.partialorder %v493_v44, 0.0 }
 0x1ca   : > { %vm496_vm4 = vcmp.gt.f32.partialorder %v488_v46, 0.0  ;;  %v498_v48 = vmul.f32 0.3, %v488_v46 }
 0x1cb   : > { %v501_v50 = vsel %vm497_vm3, %v493_v44, %v499_v47 }
 0x1cc   : > { %v500_v49 = vsel %vm496_vm4, %v488_v46, %v498_v48 }
 0x1cd   : > { %926 = vmatprep.mubr.msk.f32.mxu0 %vm513_vm5, %v500_v49 }
 0x1ce   : > { %927 = vmatmul.mubr.msk.f32.vlgmr.msra.gmra.mrb[2].mxu0 %vm513_vm5, %v501_v50 }
 0x29f   : > { %604 = sbr.rel (!%p1210_p4) target bundleno = 727 (0x2d7), region = 52 }
 0x2a1   : > { %v928_v52 = vpop.f32.mrb[2].mxu0 }
 0x2a2   : > { %v592_v53 = vadd.f32 %v928_v52, %v828_v51  ;;  %v586_v54 = vpop.f32.mrb[3].mxu0 }
 0x2a3   : > { %v587_v55 = vadd.f32 %v828_v51, %v586_v54 }
 0x2a4   : > { %597 = vst.msk [vmem:[%s1295_s18 + $0x8] sm:$0xff] %vm595_vm6, %v592_v53 }
 0x2a5   : > { %596 = vst.msk [vmem:[%s1295_s18] sm:$0xff] %vm595_vm6, %v587_v55 }
 0x2a6   : > { %s1353_s24 = smov (!%p607_p8, %s606_s24), 2 }
 0x2a7   : > { %s833_s23 = sshll.u32 %s1353_s24, 7 }
 0x2a8   : > { %p836_p9 = scmp.eq.s32.totalorder %s833_s23, 0 }
 0x2a9   : > { %s1312_s26 = sshrl.u32 (!%p836_p9), %s1353_s24, 1 }
 0x2aa   : > { %615 = sbr.rel (%p836_p9) target bundleno = 727 (0x2d7), region = 56  ;;  %p837_p10 = scmp.le.s32.totalorder (!%p836_p9), %s1312_s26, 0 }
 0x2b1   : > { %773 = sbr.rel (%p837_p10) target bundleno = 706 (0x2c2), region = 132  ;;  %s1113_s27 = smov (!%p837_p10), %s1306_s22  }
 0x2b2   : > { %s1117_s9 = smov (!%p837_p10), %s1295_s18   ;;  %s1121_s12 = smov (!%p837_p10), 0  }
 0x2b3   : > { %s1125_s29 = smov (!%p837_p10), 0  }
 0x2b8 LB: >> { %v679_v56 = vld [vmem:[%s1119_s9] sm:$0xff]  ;;  %v681_v57 = vld [vmem:[%s1119_s9 + $0x8] sm:$0xff]  ;;  %s683_s30 = sadd.s32 1, %s1123_s12  ;;  %s673_s29 = sadd.s32 1, %s1127_s29   ;;  %s1127_s29 = sphi %s1125_s29, %s673_s29   ;;  %s1123_s12 = sphi %s1121_s12, %s1122_s12   ;;  %s1119_s9 = sphi %s1117_s9, %s688_s9   ;;  %s1115_s27 = sphi %s1113_s27, %s689_s27  }
 0x2b9   : >> { %680 = vst [vmem:[%s1115_s27] sm:$0xff] %v679_v56  ;;  %682 = vst [vmem:[%s1115_s27 + $0x8] sm:$0xff] %v681_v57  ;;  %p684_p11 = scmp.ge.s32.totalorder %s683_s30, %s1312_s26  ;;  %p672_p12 = scmp.ge.s32.totalorder %s673_s29, %s1312_s26 }
 0x2bb   : >> { %s1355_s30 = smov (%p684_p11, %s683_s30), 0  ;;  %675 = sbr.rel (!%p672_p12) target bundleno = 696 (0x2b8), region = 138 }
 0x2bc   : >> { %s838_s10 = sshll.u32 %s1355_s30, 4  ;;  %s1122_s12 = smov %s1355_s30  }
 0x2bd   : >> { %s688_s9 = scalar_lea.vmem %s1295_s18, %s838_s10 [#allocation2]   ;;  %s689_s27 = scalar_lea.vmem %s1306_s22, %s838_s10  }
 0x2c2 PF: > { %s1322_s11 = sand.u32 1, %s1353_s24   ;;  %s849_s13 = sshll.u32 %s1312_s26, 4 }
 0x2c3   : > { %s694_s14 = scalar_lea.vmem %s1295_s18, %s849_s13 [#allocation2]   ;;  %s696_s15 = scalar_lea.vmem %s1306_s22, %s849_s13  }
 0x2c4   : > { %p843_p13 = scmp.le.s32.totalorder %s1322_s11, 0 }
 0x2c5   : > { %s1129_s16 = smov (!%p843_p13), %s696_s15   ;;  %s1133_s17 = smov (!%p843_p13), %s694_s14  }
 0x2c6   : > { %787 = sbr.rel (%p843_p13) target bundleno = 727 (0x2d7), region = 143  ;;  %s1137_s19 = smov (!%p843_p13), 0  }
 0x2c7   : > { %s1141_s20 = smov (!%p843_p13), 0  }
 0x2cd LB: >> { %v706_v58 = vld [vmem:[%s1135_s17] sm:$0xff]  ;;  %s708_s24 = sadd.s32 1, %s1139_s19  ;;  %s700_s20 = sadd.s32 1, %s1143_s20   ;;  %s1143_s20 = sphi %s1141_s20, %s700_s20   ;;  %s1139_s19 = sphi %s1137_s19, %s1138_s19   ;;  %s1135_s17 = sphi %s1133_s17, %s713_s17   ;;  %s1131_s16 = sphi %s1129_s16, %s714_s16  }
 0x2ce   : >> { %707 = vst [vmem:[%s1131_s16] sm:$0xff] %v706_v58  ;;  %p709_p0 = scmp.ge.s32.totalorder %s708_s24, %s1322_s11  ;;  %p699_p1 = scmp.ge.s32.totalorder %s700_s20, %s1322_s11 }
 0x2d0   : >> { %s1357_s24 = smov (%p709_p0, %s708_s24), 0  ;;  %702 = sbr.rel (!%p699_p1) target bundleno = 717 (0x2cd), region = 149 }
 0x2d1   : >> { %s844_s18 = sshll.u32 %s1357_s24, 3  ;;  %s1138_s19 = smov %s1357_s24  }
 0x2d2   : >> { %s713_s17 = scalar_lea.vmem %s694_s14, %s844_s18 [#allocation2]   ;;  %s714_s16 = scalar_lea.vmem %s696_s15, %s844_s18  }
 0x2d7 PF: > { %p14_p2 = scmp.ge.s32.totalorder %s1200_s28, 4   ;;  %s1349_s24 = smov %s1107_s25 }
 0x2d8   : > { %s1350_s25 = smov %s1208_s8  ;;  %s1351_s26 = smov %s1200_s28 }
 0x2d9   :  { %16 = sbr.rel (!%p14_p2) target bundleno = 2 (0x2), region = 160 }

</bundles_post_ra>
